<compile_context>
chip_gen: v6e
topology: v6e:2x2x1
jax: 0.10.0
libtpu: 0.0.40
codegen_flags: <defaults>
</compile_context>

<pallas_src>
import jax
import jax.numpy as jnp
from jax.experimental import pallas as pl
from jax.experimental.pallas import tpu as pltpu

LN_EPS = 1e-5
SOFTPLUS_THRESHOLD = 20.0  # matches torch.nn.functional.softplus default


def _round_up(x, m):
    return ((x + m - 1) // m) * m


def _layernorm_no_affine(h):
    mu = jnp.mean(h, axis=-1, keepdims=True)
    var = jnp.mean((h - mu) * (h - mu), axis=-1, keepdims=True)
    return (h - mu) * jax.lax.rsqrt(var + LN_EPS)


def _softplus(o):
    # torch: softplus(x) = x when x > threshold, else log(1 + exp(x))
    return jnp.where(o > SOFTPLUS_THRESHOLD, o,
                     jnp.log1p(jnp.exp(jnp.minimum(o, SOFTPLUS_THRESHOLD))))


def decoder_only_kernel(pert_ref, w1_ref, b1_ref, w2_ref, b2_ref, w3_ref, b3_ref,
                        out_ref):
    # Hidden layers are tiny (128 wide): recompute them each grid step; no scratch,
    # no cross-step state, so every grid point is fully independent.
    x = pert_ref[...].astype(w1_ref.dtype)
    h = jnp.dot(x, w1_ref[...], preferred_element_type=jnp.float32)
    h = h + b1_ref[...].astype(jnp.float32)
    h = jnp.maximum(_layernorm_no_affine(h), 0.0)

    h = jnp.dot(h.astype(w2_ref.dtype), w2_ref[...],
                preferred_element_type=jnp.float32)
    h = h + b2_ref[...].astype(jnp.float32)
    h = jnp.maximum(_layernorm_no_affine(h), 0.0)

    # Output projection for this (gene tile, batch tile) + softplus; lane-dense store.
    o = jnp.dot(h.astype(w3_ref.dtype), w3_ref[...],
                preferred_element_type=jnp.float32)
    o = o + b3_ref[...].astype(jnp.float32)
    out_ref[...] = _softplus(o).astype(out_ref.dtype)
    # TODO(synk): on v7x with bf16 I/O the EUP slot (exp + log1p per element) may bind;
    # evaluate softplus transcendentals in bf16 if profiling shows it.


def _default_tiles():
    """Per-generation default tile sizes (bounded further by actual shapes)."""
    try:
        kind = jax.devices()[0].device_kind.lower()
    except Exception:
        kind = ""
    if "v5 lite" in kind or "v5e" in kind or "v5lite" in kind:
        return 256, 1024
    return 256, 2048             # v6e / v7x: bigger gene tiles amortize per-step cost


def _vmem_capacity_bytes():
    try:
        return int(pltpu.get_tpu_info().vmem_capacity_bytes)
    except Exception:
        return 64 * 1024 * 1024  # conservative (v7x per-TC)


def decoder_only_forward(perturbation, params, *, batch_tile=None, gene_tile=None,
                         out_dtype=None):
    """perturbation: [B, n_perts] one-hot; returns [B, n_genes] predicted expression.

    out_dtype defaults to the weight dtype (bf16 weights -> bf16 output, the
    recommended HBM-traffic-minimizing configuration).
    """
    w1, b1, w2, b2, w3, b3 = params
    b1 = b1.reshape(1, -1)
    b2 = b2.reshape(1, -1)
    b3 = b3.reshape(1, -1)

    if out_dtype is None:
        out_dtype = w3.dtype

    # Cast the one-hot input to the weight dtype (exact for 0/1 values).
    perturbation = perturbation.astype(w1.dtype)
    B, n_perts = perturbation.shape
    hidden = w1.shape[1]
    n_genes = w3.shape[1]

    bt_default, gt_default = _default_tiles()
    if batch_tile is None:
        batch_tile = bt_default
    if gene_tile is None:
        gene_tile = gt_default

    # bf16 outputs pack 16 rows per sublane group; keep tiles natively packed.
    sub = 16 if jnp.dtype(out_dtype).itemsize == 2 else 8
    batch_tile = min(batch_tile, _round_up(B, sub))
    gene_tile = min(gene_tile, _round_up(n_genes, 128))   # lane-dense output tiles

    # Pad batch and gene dims up to tile multiples; result is sliced back below.
    B_pad = _round_up(B, batch_tile)
    G_pad = _round_up(n_genes, gene_tile)
    if B_pad != B:
        perturbation = jnp.pad(perturbation, ((0, B_pad - B), (0, 0)))
    if G_pad != n_genes:
        w3 = jnp.pad(w3, ((0, 0), (0, G_pad - n_genes)))
        b3 = jnp.pad(b3, ((0, 0), (0, G_pad - n_genes)))

    # Gene tiles OUTER (slow), batch tiles INNER (fast): W3/b3 block index is constant
    # across the inner axis -> each W3 slab is DMA'd from HBM exactly once.
    grid = (G_pad // gene_tile, B_pad // batch_tile)

    # VMEM budget estimate (double-buffered tiles) -> explicit limit, clamped to device.
    in_bytes = jnp.dtype(perturbation.dtype).itemsize
    w_bytes = jnp.dtype(w1.dtype).itemsize
    o_bytes = jnp.dtype(out_dtype).itemsize
    vmem_est = (2 * batch_tile * n_perts * in_bytes            # pert tiles
                + 2 * (n_perts + 1) * hidden * w_bytes         # W1 / b1 (resident)
                + 2 * (hidden + 1) * hidden * w_bytes          # W2 / b2 (resident)
                + 2 * (hidden + 1) * gene_tile * w_bytes       # W3 / b3 tiles
                + 2 * batch_tile * gene_tile * o_bytes)        # output tiles
    vmem_cap = _vmem_capacity_bytes()
    vmem_limit = int(max(2 * vmem_est, 32 * 1024 * 1024))
    vmem_limit = int(min(vmem_limit, vmem_cap - 8 * 1024 * 1024))
    vmem_limit = int(max(vmem_limit, vmem_est + 4 * 1024 * 1024))

    full = lambda g, b: (0, 0)  # small weights stay fully resident

    out = pl.pallas_call(
        decoder_only_kernel,
        out_shape=jax.ShapeDtypeStruct((B_pad, G_pad), out_dtype),
        grid_spec=pltpu.PrefetchScalarGridSpec(
            num_scalar_prefetch=0,
            grid=grid,
            in_specs=[
                pl.BlockSpec((batch_tile, n_perts), lambda g, b: (b, 0)),
                pl.BlockSpec((n_perts, hidden), full),
                pl.BlockSpec((1, hidden), full),
                pl.BlockSpec((hidden, hidden), full),
                pl.BlockSpec((1, hidden), full),
                pl.BlockSpec((hidden, gene_tile), lambda g, b: (0, g)),
                pl.BlockSpec((1, gene_tile), lambda g, b: (0, g)),
            ],
            out_specs=pl.BlockSpec((batch_tile, gene_tile), lambda g, b: (g, b)
                                   if False else (b, g)),
        ),
        compiler_params=pltpu.CompilerParams(
            # Gene (outer) axis parallel: many tiles for realistic n_genes, so both
            # v7x TensorCores stream disjoint W3/output slabs even at small batch.
            # Batch (inner) axis kept in-order so the constant-index W3 block is
            # reused across consecutive steps without re-DMA.
            dimension_semantics=("parallel", "arbitrary"),
            vmem_limit_bytes=vmem_limit,
        ),
    )(perturbation, w1, b1, w2, b2, w3, b3)

    return out[:B, :n_genes]


def init_params(key, n_perts, hidden, n_genes):
    """Deterministic synthetic weights (shapes match the PyTorch MLP)."""
    ks = jax.random.split(key, 6)

    def lin(kw, kb, fan_in, fan_out):
        bound = 1.0 / jnp.sqrt(fan_in)
        w = jax.random.uniform(kw, (fan_in, fan_out), jnp.float32, -bound, bound)
        b = jax.random.uniform(kb, (1, fan_out), jnp.float32, -bound, bound)
        return w, b

    w1, b1 = lin(ks[0], ks[1], n_perts, hidden)
    w2, b2 = lin(ks[2], ks[3], hidden, hidden)
    w3, b3 = lin(ks[4], ks[5], hidden, n_genes)
    return (w1, b1, w2, b2, w3, b3)


def reference_forward(perturbation, params):
    w1, b1, w2, b2, w3, b3 = params
    h = jnp.maximum(_layernorm_no_affine(perturbation @ w1 + b1), 0.0)
    h = jnp.maximum(_layernorm_no_affine(h @ w2 + b2), 0.0)
    o = h @ w3 + b3
    return _softplus(o)


if __name__ == "__main__":
    key = jax.random.PRNGKey(0)
    batch = 8          # batch_size
    n_perts = 8        # number of distinct perturbation conditions (one-hot dim)
    hidden = 128       # self.encoder_width (fixed in module __init__)
    n_genes = 64       # encoder_input_dim == n_genes

    k_pert, k_ctrl, k_param = jax.random.split(key, 3)

    # one-hot perturbation matrix (what convert_pert_flags_to_one_hot produces)
    pert_idx = jax.random.randint(k_pert, (batch,), 0, n_perts)
    perturbation = jax.nn.one_hot(pert_idx, n_perts, dtype=jnp.float32)

    # control_input exists in the signature but is unused by DecoderOnly.forward
    control_input = jax.random.uniform(k_ctrl, (batch, n_genes), jnp.float32)  # noqa: F841

    params = init_params(k_param, n_perts, hidden, n_genes)
    ref = reference_forward(perturbation, params)

    # f32 weights / f32 output: tight agreement with the JAX reference.
    out = jax.block_until_ready(decoder_only_forward(perturbation, params))
    assert out.shape == (batch, n_genes)
    assert jnp.allclose(out, ref, atol=1e-5, rtol=1e-5), "f32 kernel mismatch"

    # Recommended fast path: bf16 weights + bf16 output (halves W3 read and output
    # write; MXU accumulates in f32). Looser tolerance vs the f32 reference.
    params_bf16 = tuple(p.astype(jnp.bfloat16) for p in params)
    out_bf16 = jax.block_until_ready(
        decoder_only_forward(perturbation, params_bf16))
    assert out_bf16.shape == (batch, n_genes)
    assert out_bf16.dtype == jnp.bfloat16
    assert jnp.allclose(out_bf16.astype(jnp.float32), ref, atol=1e-1, rtol=1e-1), \
        "bf16 kernel deviates too much from reference"

    print("KERNEL_OK")
</pallas_src>

<mosaic_0001>
module attributes {stable_mosaic.version = 11 : i64} {
  func.func @decoder_only_kernel(%arg0: i32, %arg1: i32, %arg2: memref<8x8xf32, #tpu.memory_space<vmem>>, %arg3: memref<8x128xf32, #tpu.memory_space<vmem>>, %arg4: memref<1x128xf32, #tpu.memory_space<vmem>>, %arg5: memref<128x128xf32, #tpu.memory_space<vmem>>, %arg6: memref<1x128xf32, #tpu.memory_space<vmem>>, %arg7: memref<128x128xf32, #tpu.memory_space<vmem>>, %arg8: memref<1x128xf32, #tpu.memory_space<vmem>>, %arg9: memref<8x128xf32, #tpu.memory_space<vmem>>) attributes {dimension_semantics = [#tpu.dimension_semantics<parallel>, #tpu.dimension_semantics<arbitrary>], iteration_bounds = array<i64: 1, 1>, scalar_prefetch = 0 : i64, scratch_operands = 0 : i64, tpu.core_type = #tpu.core_type<tc>, window_params = [{transform_indices = @transform_0, window_bounds = array<i64: 8, 8>}, {pipeline_mode = #tpu.pipeline_mode<synchronous>, transform_indices = @transform_1, window_bounds = array<i64: 8, 128>}, {pipeline_mode = #tpu.pipeline_mode<synchronous>, transform_indices = @transform_2, window_bounds = array<i64: 1, 128>}, {pipeline_mode = #tpu.pipeline_mode<synchronous>, transform_indices = @transform_3, window_bounds = array<i64: 128, 128>}, {pipeline_mode = #tpu.pipeline_mode<synchronous>, transform_indices = @transform_4, window_bounds = array<i64: 1, 128>}, {transform_indices = @transform_5, window_bounds = array<i64: 128, 128>}, {transform_indices = @transform_6, window_bounds = array<i64: 1, 128>}, {transform_indices = @transform_7, window_bounds = array<i64: 8, 128>}]} {
    %c0 = arith.constant 0 : index
    %c0_0 = arith.constant 0 : index
    %0 = vector.load %arg2[%c0, %c0_0] : memref<8x8xf32, #tpu.memory_space<vmem>>, vector<8x8xf32>
    %c0_1 = arith.constant 0 : index
    %c0_2 = arith.constant 0 : index
    %1 = vector.load %arg3[%c0_1, %c0_2] : memref<8x128xf32, #tpu.memory_space<vmem>>, vector<8x128xf32>
    %cst = arith.constant dense<0.000000e+00> : vector<8x128xf32>
    %2 = tpu.matmul %0, %1, %cst {dimension_numbers = #tpu.dot_dimension_numbers<[1], [0], [0], [1], [0, 0, 1, 1], [], []>} : vector<8x8xf32>, vector<8x128xf32>, vector<8x128xf32> -> vector<8x128xf32>
    %c0_3 = arith.constant 0 : index
    %c0_4 = arith.constant 0 : index
    %3 = vector.load %arg4[%c0_3, %c0_4] : memref<1x128xf32, #tpu.memory_space<vmem>>, vector<1x128xf32>
    %4 = vector.broadcast %3 : vector<1x128xf32> to vector<8x128xf32>
    %5 = arith.addf %2, %4 : vector<8x128xf32>
    %cst_5 = arith.constant dense<0.000000e+00> : vector<8xf32>
    %6 = vector.multi_reduction <add>, %5, %cst_5 [1] : vector<8x128xf32> to vector<8xf32>
    %7 = vector.shape_cast %6 : vector<8xf32> to vector<8x1xf32>
    %cst_6 = arith.constant 1.280000e+02 : f32
    %8 = vector.broadcast %cst_6 : f32 to vector<8x1xf32>
    %9 = arith.divf %7, %8 : vector<8x1xf32>
    %10 = vector.broadcast %9 : vector<8x1xf32> to vector<8x128xf32>
    %11 = arith.subf %5, %10 : vector<8x128xf32>
    %12 = vector.broadcast %9 : vector<8x1xf32> to vector<8x128xf32>
    %13 = arith.subf %5, %12 : vector<8x128xf32>
    %14 = arith.mulf %11, %13 : vector<8x128xf32>
    %cst_7 = arith.constant dense<0.000000e+00> : vector<8xf32>
    %15 = vector.multi_reduction <add>, %14, %cst_7 [1] : vector<8x128xf32> to vector<8xf32>
    %16 = vector.shape_cast %15 : vector<8xf32> to vector<8x1xf32>
    %cst_8 = arith.constant 1.280000e+02 : f32
    %17 = vector.broadcast %cst_8 : f32 to vector<8x1xf32>
    %18 = arith.divf %16, %17 : vector<8x1xf32>
    %19 = vector.broadcast %9 : vector<8x1xf32> to vector<8x128xf32>
    %20 = arith.subf %5, %19 : vector<8x128xf32>
    %cst_9 = arith.constant 9.99999974E-6 : f32
    %21 = vector.broadcast %cst_9 : f32 to vector<8x1xf32>
    %22 = arith.addf %18, %21 : vector<8x1xf32>
    %23 = math.rsqrt %22 : vector<8x1xf32>
    %24 = vector.broadcast %23 : vector<8x1xf32> to vector<8x128xf32>
    %25 = arith.mulf %20, %24 : vector<8x128xf32>
    %cst_10 = arith.constant 0.000000e+00 : f32
    %26 = vector.broadcast %cst_10 : f32 to vector<8x128xf32>
    %27 = arith.maximumf %25, %26 : vector<8x128xf32>
    %c0_11 = arith.constant 0 : index
    %c0_12 = arith.constant 0 : index
    %28 = vector.load %arg5[%c0_11, %c0_12] : memref<128x128xf32, #tpu.memory_space<vmem>>, vector<128x128xf32>
    %cst_13 = arith.constant dense<0.000000e+00> : vector<8x128xf32>
    %29 = tpu.matmul %27, %28, %cst_13 {dimension_numbers = #tpu.dot_dimension_numbers<[1], [0], [0], [1], [0, 0, 1, 1], [], []>} : vector<8x128xf32>, vector<128x128xf32>, vector<8x128xf32> -> vector<8x128xf32>
    %c0_14 = arith.constant 0 : index
    %c0_15 = arith.constant 0 : index
    %30 = vector.load %arg6[%c0_14, %c0_15] : memref<1x128xf32, #tpu.memory_space<vmem>>, vector<1x128xf32>
    %31 = vector.broadcast %30 : vector<1x128xf32> to vector<8x128xf32>
    %32 = arith.addf %29, %31 : vector<8x128xf32>
    %cst_16 = arith.constant dense<0.000000e+00> : vector<8xf32>
    %33 = vector.multi_reduction <add>, %32, %cst_16 [1] : vector<8x128xf32> to vector<8xf32>
    %34 = vector.shape_cast %33 : vector<8xf32> to vector<8x1xf32>
    %cst_17 = arith.constant 1.280000e+02 : f32
    %35 = vector.broadcast %cst_17 : f32 to vector<8x1xf32>
    %36 = arith.divf %34, %35 : vector<8x1xf32>
    %37 = vector.broadcast %36 : vector<8x1xf32> to vector<8x128xf32>
    %38 = arith.subf %32, %37 : vector<8x128xf32>
    %39 = vector.broadcast %36 : vector<8x1xf32> to vector<8x128xf32>
    %40 = arith.subf %32, %39 : vector<8x128xf32>
    %41 = arith.mulf %38, %40 : vector<8x128xf32>
    %cst_18 = arith.constant dense<0.000000e+00> : vector<8xf32>
    %42 = vector.multi_reduction <add>, %41, %cst_18 [1] : vector<8x128xf32> to vector<8xf32>
    %43 = vector.shape_cast %42 : vector<8xf32> to vector<8x1xf32>
    %cst_19 = arith.constant 1.280000e+02 : f32
    %44 = vector.broadcast %cst_19 : f32 to vector<8x1xf32>
    %45 = arith.divf %43, %44 : vector<8x1xf32>
    %46 = vector.broadcast %36 : vector<8x1xf32> to vector<8x128xf32>
    %47 = arith.subf %32, %46 : vector<8x128xf32>
    %cst_20 = arith.constant 9.99999974E-6 : f32
    %48 = vector.broadcast %cst_20 : f32 to vector<8x1xf32>
    %49 = arith.addf %45, %48 : vector<8x1xf32>
    %50 = math.rsqrt %49 : vector<8x1xf32>
    %51 = vector.broadcast %50 : vector<8x1xf32> to vector<8x128xf32>
    %52 = arith.mulf %47, %51 : vector<8x128xf32>
    %cst_21 = arith.constant 0.000000e+00 : f32
    %53 = vector.broadcast %cst_21 : f32 to vector<8x128xf32>
    %54 = arith.maximumf %52, %53 : vector<8x128xf32>
    %c0_22 = arith.constant 0 : index
    %c0_23 = arith.constant 0 : index
    %55 = vector.load %arg7[%c0_22, %c0_23] : memref<128x128xf32, #tpu.memory_space<vmem>>, vector<128x128xf32>
    %cst_24 = arith.constant dense<0.000000e+00> : vector<8x128xf32>
    %56 = tpu.matmul %54, %55, %cst_24 {dimension_numbers = #tpu.dot_dimension_numbers<[1], [0], [0], [1], [0, 0, 1, 1], [], []>} : vector<8x128xf32>, vector<128x128xf32>, vector<8x128xf32> -> vector<8x128xf32>
    %c0_25 = arith.constant 0 : index
    %c0_26 = arith.constant 0 : index
    %57 = vector.load %arg8[%c0_25, %c0_26] : memref<1x128xf32, #tpu.memory_space<vmem>>, vector<1x128xf32>
    %58 = vector.broadcast %57 : vector<1x128xf32> to vector<8x128xf32>
    %59 = arith.addf %56, %58 : vector<8x128xf32>
    %cst_27 = arith.constant 2.000000e+01 : f32
    %60 = vector.broadcast %cst_27 : f32 to vector<8x128xf32>
    %61 = arith.cmpf ogt, %59, %60 : vector<8x128xf32>
    %cst_28 = arith.constant 2.000000e+01 : f32
    %62 = vector.broadcast %cst_28 : f32 to vector<8x128xf32>
    %63 = arith.minimumf %59, %62 : vector<8x128xf32>
    %64 = math.exp %63 : vector<8x128xf32>
    %65 = math.log1p %64 : vector<8x128xf32>
    %66 = arith.select %61, %59, %65 : vector<8x128xi1>, vector<8x128xf32>
    %c0_29 = arith.constant 0 : index
    %c0_30 = arith.constant 0 : index
    %67 = vector.load %arg9[%c0_29, %c0_30] : memref<8x128xf32, #tpu.memory_space<vmem>>, vector<8x128xf32>
    tpu.vector_store %arg9[%c0_29, %c0_30], %66 {strides = array<i32>} : memref<8x128xf32, #tpu.memory_space<vmem>>, vector<8x128xf32>,
    return
  }
  func.func @transform_0(%arg0: i32, %arg1: i32) -> (i32, i32) {
    %c0_i32 = arith.constant 0 : i32
    %c0_i32_0 = arith.constant 0 : i32
    return %arg1, %c0_i32 : i32, i32
  }
  func.func @transform_1(%arg0: i32, %arg1: i32) -> (i32, i32) {
    %c0_i32 = arith.constant 0 : i32
    %c0_i32_0 = arith.constant 0 : i32
    %c0_i32_1 = arith.constant 0 : i32
    return %c0_i32, %c0_i32_0 : i32, i32
  }
  func.func @transform_2(%arg0: i32, %arg1: i32) -> (i32, i32) {
    %c0_i32 = arith.constant 0 : i32
    %c0_i32_0 = arith.constant 0 : i32
    %c0_i32_1 = arith.constant 0 : i32
    return %c0_i32, %c0_i32_0 : i32, i32
  }
  func.func @transform_3(%arg0: i32, %arg1: i32) -> (i32, i32) {
    %c0_i32 = arith.constant 0 : i32
    %c0_i32_0 = arith.constant 0 : i32
    %c0_i32_1 = arith.constant 0 : i32
    return %c0_i32, %c0_i32_0 : i32, i32
  }
  func.func @transform_4(%arg0: i32, %arg1: i32) -> (i32, i32) {
    %c0_i32 = arith.constant 0 : i32
    %c0_i32_0 = arith.constant 0 : i32
    %c0_i32_1 = arith.constant 0 : i32
    return %c0_i32, %c0_i32_0 : i32, i32
  }
  func.func @transform_5(%arg0: i32, %arg1: i32) -> (i32, i32) {
    %c0_i32 = arith.constant 0 : i32
    %c0_i32_0 = arith.constant 0 : i32
    return %c0_i32, %arg0 : i32, i32
  }
  func.func @transform_6(%arg0: i32, %arg1: i32) -> (i32, i32) {
    %c0_i32 = arith.constant 0 : i32
    %c0_i32_0 = arith.constant 0 : i32
    return %c0_i32, %arg0 : i32, i32
  }
  func.func @transform_7(%arg0: i32, %arg1: i32) -> (i32, i32) {
    %c0_i32 = arith.constant 0 : i32
    return %arg1, %arg0 : i32, i32
  }
}

</mosaic_0001>

<bundles_post_ra>
// kernel: tpu_custom_call.1
= control target key start
LH: loop header
LB: loop body
LE: loop exit
PB: predicated region body
PF: predicated region fallthrough
CT: control target
= control target key end

     0   :  { %12 = vsyncpa [#allocation3], 0  ;;  %s753_s0 = inlined_call_operand.hbm [shape: f32[8,8], index: 0, kind: input, shape index: {}]   ;;  %s754_s1 = inlined_call_operand.hbm [shape: f32[8,128], index: 1, kind: input, shape index: {}]   ;;  %s755_s2 = inlined_call_operand.vmem [shape: f32[1,128], index: 2, kind: input, shape index: {}]   ;;  %s756_s3 = inlined_call_operand.hbm [shape: f32[128,128], index: 3, kind: input, shape index: {}]   ;;  %s757_s4 = inlined_call_operand.vmem [shape: f32[1,128], index: 4, kind: input, shape index: {}]   ;;  %s758_s5 = inlined_call_operand.hbm [shape: f32[128,128], index: 5, kind: input, shape index: {}]   ;;  %s759_s6 = inlined_call_operand.vmem [shape: f32[1,128], index: 6, kind: input, shape index: {}]   ;;  %s760_s7 = inlined_call_operand.hbm [shape: f32[8,128], index: 7, kind: output, shape index: {}]  }
   0x1   :  { %13 = vsyncpa [#allocation6], 0 }
   0x2   :  { %14 = vsyncpa [#allocation9], 0 }
   0x3   :  { %15 = vsyncpa [#allocation4], 0  ;;  %s644_s24 = smov [#allocation5]   ;;  %s645_s26 = smov [#allocation2]  }
   0x4   :  { %s32_s25 = sshll.u32 %s644_s24, 4  ;;  %s22_s27 = sshll.u32 %s645_s26, 4  ;;  %s33_s25 = int_to_ptr.vmem [resolvable:$true] %s32_s25  ;;  %s23_s27 = int_to_ptr.vmem [resolvable:$true] %s22_s27 }
   0x5   :  { %s544_s28 = scalar_lea.vmem %s33_s25, 128  ;;  %p549_p1 = scmp.lt.s32.totalorder %s33_s25, %s33_s25 }
   0x6   :  { %p545_p0 = scmp.ne.s32.totalorder %s33_s25, %s544_s28  ;;  %p550_p2 = scmp.lt.s32.totalorder %s544_s28, %s544_s28 }
   0x8   :  { %p551_p3 = por %p550_p2, %p549_p1 }
   0xa   :  { %p552_p4 = pnand %p551_p3, %p545_p0 }
   0xc   :  { %555 = shalt.err (!%p552_p4)
}
   0xd   :  { %35 = dma.hbm_to_vmem [thread:$0]  %s754_s1, 128, %s33_s25, [#allocation6]  }
   0xe   :  { %s564_s8 = scalar_lea.vmem %s23_s27, 128  ;;  %p569_p6 = scmp.lt.s32.totalorder %s23_s27, %s23_s27 }
   0xf   :  { %p565_p5 = scmp.ne.s32.totalorder %s23_s27, %s564_s8  ;;  %p570_p7 = scmp.lt.s32.totalorder %s564_s8, %s564_s8 }
  0x11   :  { %p571_p8 = por %p570_p7, %p569_p6 }
  0x13   :  { %p572_p9 = pnand %p571_p8, %p565_p5 }
  0x15   :  { %575 = shalt.err (!%p572_p9)
}
  0x16   :  { %25 = dma.hbm_to_vmem [thread:$0]  %s753_s0, 128, %s23_s27, [#allocation3]  }
  0x17   :  { %s646_s11 = smov [#allocation7]  }
  0x18   :  { %s43_s12 = sshll.u32 %s646_s11, 4  ;;  %s44_s12 = int_to_ptr.vmem [resolvable:$true] %s43_s12 }
  0x19   :  { %s584_s13 = scalar_lea.vmem %s44_s12, 2048  ;;  %p589_p11 = scmp.lt.s32.totalorder %s44_s12, %s44_s12 }
  0x1a   :  { %p585_p10 = scmp.ne.s32.totalorder %s44_s12, %s584_s13  ;;  %p590_p12 = scmp.lt.s32.totalorder %s584_s13, %s584_s13 }
  0x1c   :  { %p591_p13 = por %p590_p12, %p589_p11 }
  0x1e   :  { %p592_p0 = pnand %p591_p13, %p585_p10 }
  0x20   :  { %595 = shalt.err (!%p592_p0)
}
  0x21   :  { %s647_s1 = smov 128   ;;  %s648_s14 = smov 8  }
  0x22   :  { %49 = dma.hbm_to_vmem [thread:$0]  %s756_s3, 2048, %s44_s12, [#allocation6], %s647_s1, %s647_s1, %s648_s14  }
  0x23   :  { %s649_s17 = smov [#allocation8]  }
  0x24   :  { %s57_s18 = sshll.u32 %s649_s17, 4  ;;  %s58_s18 = int_to_ptr.vmem [resolvable:$true] %s57_s18 }
  0x25   :  { %s604_s0 = scalar_lea.vmem %s58_s18, 2048  ;;  %p609_p2 = scmp.lt.s32.totalorder %s58_s18, %s58_s18 }
  0x26   :  { %p605_p1 = scmp.ne.s32.totalorder %s58_s18, %s604_s0  ;;  %p610_p3 = scmp.lt.s32.totalorder %s604_s0, %s604_s0 }
  0x28   :  { %p611_p4 = por %p610_p3, %p609_p2 }
  0x2a   :  { %p612_p5 = pnand %p611_p4, %p605_p1 }
  0x2c   :  { %615 = shalt.err (!%p612_p5)
}
  0x2d   :  { %63 = dma.hbm_to_vmem [thread:$0]  %s758_s5, 2048, %s58_s18, [#allocation9], %s647_s1, %s647_s1, %s648_s14  }
  0x2e   :  { %636 = dma.done.wait [#allocation3], 128  }
  0x2f   :  { %637 = vsyncadd [#allocation3], 4294967168 }
  0x30   :  { %638 = dma.done.wait [#allocation6], 2176  }
  0x31   :  { %639 = vsyncadd [#allocation6], 4294965120 }
  0x32   :  { %640 = dma.done.wait [#allocation9], 2048  }
  0x33   :  { %641 = vsyncadd [#allocation9], 4294965248  ;;  %v650_v0 = vmov 0.0   ;;  %vm651_vm0 = vmmov 0   ;;  %vm87_vm1 = vcmask 64512   ;;  %v79_v1 = vld [vmem:[#allocation5] sm:$0xff] }
  0x34   :  { %444 = vmatprep.subr.mxu0 %v650_v0  ;;  %446 = vmatprep.mubr.msk.f32.mxu0 %vm651_vm0, %v650_v0  ;;  %v78_v2 = vld [vmem:[#allocation2] sm:$0xff]  ;;  %v189_v7 = vld [vmem:[#allocation7 + $0x78] sm:$0xff]  ;;  %v187_v9 = vld [vmem:[#allocation7 + $0x68] sm:$0xff]  ;;  %s652_s23 = smov [#allocation10]  }
  0x35   :  { %449 = vmatprep.subr.mxu1 %v650_v0  ;;  %481 = vmatprep.mubr.msk.f32.mxu1 %vm651_vm0, %v650_v0  ;;  %v404_v3 = vld [vmem:[%s755_s2] ss:$0 sm:$0xff]  ;;  %v186_v10 = vld [vmem:[#allocation7 + $0x60] sm:$0xff]  ;;  %v185_v11 = vld [vmem:[#allocation7 + $0x58] sm:$0xff]  ;;  %s393_s24 = sshll.u32 %s652_s23, 4  ;;  %s394_s24 = int_to_ptr.vmem [resolvable:$true] %s393_s24 }
  0x36   :  { %445 = vmatpush3.msra.mxu0 %v79_v1  ;;  %v188_v8 = vld [vmem:[#allocation7 + $0x70] sm:$0xff]  ;;  %450 = vmatpush3.msra.mxu1 %v189_v7  ;;  %v183_v17 = vld [vmem:[#allocation7 + $0x48] sm:$0xff]  ;;  %v182_v18 = vld [vmem:[#allocation7 + $0x40] sm:$0xff]  ;;  %p621_p7 = scmp.lt.s32.totalorder %s394_s24, %s394_s24 }
  0x37   :  { %447 = vmatmul.mubr.msk.f32.vlgmr.msra.gmra.mxu0 %vm87_vm1, %v78_v2  ;;  %484 = vmatprep.subr.mxu0 %v650_v0  ;;  %v184_v16 = vld [vmem:[#allocation7 + $0x50] sm:$0xff]  ;;  %v181_v19 = vld [vmem:[#allocation7 + $0x38] sm:$0xff]  ;;  %v179_v21 = vld [vmem:[#allocation7 + $0x28] sm:$0xff] }
  0x38   :  { %516 = vmatprep.mubr.msk.f32.mxu0 %vm651_vm0, %v650_v0  ;;  %451 = vmatprep.subr.mxu1 %v650_v0  ;;  %v180_v20 = vld [vmem:[#allocation7 + $0x30] sm:$0xff]  ;;  %v178_v22 = vld [vmem:[#allocation7 + $0x20] sm:$0xff]  ;;  %v177_v23 = vld [vmem:[#allocation7 + $0x18] sm:$0xff] }
  0x39   :  { %452 = vmatpush3.msra.mxu1 %v188_v8  ;;  %v176_v24 = vld [vmem:[#allocation7 + $0x10] sm:$0xff]  ;;  %v175_v25 = vld [vmem:[#allocation7 + $0x8] sm:$0xff]  ;;  %v174_v26 = vld [vmem:[#allocation7] sm:$0xff] }
  0x3a   :  { %453 = vmatprep.subr.mxu1 %v650_v0  ;;  %v406_v33 = vld [vmem:[%s757_s4] ss:$0 sm:$0xff]  ;;  %v294_v37 = vld [vmem:[#allocation8 + $0x78] sm:$0xff]  ;;  %v292_v39 = vld [vmem:[#allocation8 + $0x68] sm:$0xff] }
  0x3b   :  { %454 = vmatpush3.msra.mxu1 %v187_v9  ;;  %v293_v38 = vld [vmem:[#allocation8 + $0x70] sm:$0xff]  ;;  %485 = vmatpush3.msra.mxu0 %v294_v37  ;;  %v291_v40 = vld [vmem:[#allocation8 + $0x60] sm:$0xff]  ;;  %v290_v41 = vld [vmem:[#allocation8 + $0x58] sm:$0xff] }
  0x3c   :  { %455 = vmatprep.subr.mxu1 %v650_v0  ;;  %486 = vmatprep.subr.mxu0 %v650_v0  ;;  %v289_v46 = vld [vmem:[#allocation8 + $0x50] sm:$0xff]  ;;  %v288_v47 = vld [vmem:[#allocation8 + $0x48] sm:$0xff]  ;;  %v287_v48 = vld [vmem:[#allocation8 + $0x40] sm:$0xff] }
  0x3d   :  { %456 = vmatpush3.msra.mxu1 %v186_v10  ;;  %487 = vmatpush3.msra.mxu0 %v293_v38  ;;  %v286_v49 = vld [vmem:[#allocation8 + $0x38] sm:$0xff]  ;;  %v285_v50 = vld [vmem:[#allocation8 + $0x30] sm:$0xff]  ;;  %v284_v51 = vld [vmem:[#allocation8 + $0x28] sm:$0xff] }
  0x3e   :  { %457 = vmatprep.subr.mxu1 %v650_v0  ;;  %488 = vmatprep.subr.mxu0 %v650_v0  ;;  %v283_v52 = vld [vmem:[#allocation8 + $0x20] sm:$0xff]  ;;  %v282_v53 = vld [vmem:[#allocation8 + $0x18] sm:$0xff]  ;;  %v281_v54 = vld [vmem:[#allocation8 + $0x10] sm:$0xff] }
  0x3f   :  { %458 = vmatpush3.msra.mxu1 %v185_v11  ;;  %489 = vmatpush3.msra.mxu0 %v292_v39  ;;  %v280_v55 = vld [vmem:[#allocation8 + $0x8] sm:$0xff]  ;;  %v279_v56 = vld [vmem:[#allocation8] sm:$0xff]  ;;  %v407_v63 = vld [vmem:[%s759_s6] ss:$0 sm:$0xff]  ;;  %s616_s6 = scalar_lea.vmem %s394_s24, 128 }
  0x40   :  { %459 = vmatprep.subr.mxu1 %v650_v0  ;;  %490 = vmatprep.subr.mxu0 %v650_v0  ;;  %p617_p6 = scmp.ne.s32.totalorder %s394_s24, %s616_s6  ;;  %p622_p8 = scmp.lt.s32.totalorder %s616_s6, %s616_s6 }
  0x41   :  { %460 = vmatpush3.msra.mxu1 %v184_v16  ;;  %491 = vmatpush3.msra.mxu0 %v291_v40 }
  0x42   :  { %461 = vmatprep.subr.mxu1 %v650_v0  ;;  %492 = vmatprep.subr.mxu0 %v650_v0  ;;  %p623_p9 = por %p622_p8, %p621_p7 }
  0x43   :  { %462 = vmatpush3.msra.mxu1 %v183_v17  ;;  %493 = vmatpush3.msra.mxu0 %v290_v41 }
  0x44   :  { %463 = vmatprep.subr.mxu1 %v650_v0  ;;  %494 = vmatprep.subr.mxu0 %v650_v0  ;;  %p624_p10 = pnand %p623_p9, %p617_p6 }
  0x45   :  { %464 = vmatpush3.msra.mxu1 %v182_v18  ;;  %495 = vmatpush3.msra.mxu0 %v289_v46 }
  0x46   :  { %465 = vmatprep.subr.mxu1 %v650_v0  ;;  %496 = vmatprep.subr.mxu0 %v650_v0 }
  0x47   :  { %466 = vmatpush3.msra.mxu1 %v181_v19  ;;  %497 = vmatpush3.msra.mxu0 %v288_v47 }
  0x48   :  { %467 = vmatprep.subr.mxu1 %v650_v0  ;;  %498 = vmatprep.subr.mxu0 %v650_v0 }
  0x49   :  { %468 = vmatpush3.msra.mxu1 %v180_v20  ;;  %499 = vmatpush3.msra.mxu0 %v287_v48 }
  0x4a   :  { %469 = vmatprep.subr.mxu1 %v650_v0  ;;  %500 = vmatprep.subr.mxu0 %v650_v0 }
  0x4b   :  { %470 = vmatpush3.msra.mxu1 %v179_v21  ;;  %501 = vmatpush3.msra.mxu0 %v286_v49 }
  0x4c   :  { %471 = vmatprep.subr.mxu1 %v650_v0  ;;  %502 = vmatprep.subr.mxu0 %v650_v0 }
  0x4d   :  { %472 = vmatpush3.msra.mxu1 %v178_v22  ;;  %503 = vmatpush3.msra.mxu0 %v285_v50 }
  0x4e   :  { %473 = vmatprep.subr.mxu1 %v650_v0  ;;  %504 = vmatprep.subr.mxu0 %v650_v0 }
  0x4f   :  { %474 = vmatpush3.msra.mxu1 %v177_v23  ;;  %505 = vmatpush3.msra.mxu0 %v284_v51 }
  0x50   :  { %475 = vmatprep.subr.mxu1 %v650_v0  ;;  %506 = vmatprep.subr.mxu0 %v650_v0 }
  0x51   :  { %476 = vmatpush3.msra.mxu1 %v176_v24  ;;  %507 = vmatpush3.msra.mxu0 %v283_v52 }
  0x52   :  { %477 = vmatprep.subr.mxu1 %v650_v0  ;;  %508 = vmatprep.subr.mxu0 %v650_v0 }
  0x53   :  { %478 = vmatpush3.msra.mxu1 %v175_v25  ;;  %509 = vmatpush3.msra.mxu0 %v282_v53 }
  0x54   :  { %479 = vmatprep.subr.mxu1 %v650_v0  ;;  %510 = vmatprep.subr.mxu0 %v650_v0 }
  0x55   :  { %480 = vmatpush3.msra.mxu1 %v174_v26  ;;  %511 = vmatpush3.msra.mxu0 %v281_v54 }
  0x56   :  { %512 = vmatprep.subr.mxu0 %v650_v0 }
  0x57   :  { %513 = vmatpush3.msra.mxu0 %v280_v55 }
  0x58   :  { %514 = vmatprep.subr.mxu0 %v650_v0 }
  0x59   :  { %515 = vmatpush3.msra.mxu0 %v279_v56 }
  0xf7   :  { %v157_v4 = vpop.f32.mrf.mxu0 }
  0xf8   :  { %v158_v5 = vadd.f32 %v404_v3, %v157_v4 }
  0xf9   :  { %v448_v6 = vpop.f32.mrf.mxu0 }
  0xfa   :  { %161 = vadd.xlane.f32.xlu0 %v158_v5 }
 0x183   :  { %v162_v12 = vpop.xlane.xlu0 %161 }
 0x184   :  { %v164_v13 = vmul.f32 0.0078125, %v162_v12 }
 0x186   :  { %v165_v14 = vsub.f32 %v158_v5, %v164_v13 }
 0x188   :  { %v166_v15 = vmul.f32 %v165_v14, %v165_v14 }
 0x18a   :  { %167 = vadd.xlane.f32.xlu0 %v166_v15 }
 0x213   :  { %v168_v27 = vpop.xlane.xlu0 %167 }
 0x214   :  { %v169_v28 = vmul.f32 0.0078125, %v168_v27 }
 0x216   :  { %v170_v29 = vadd.f32 1e-05, %v169_v28 }
 0x218   :  { %528 = vrsqrt.f32 %v170_v29 }
 0x225   :  { %v529_v30 = vpop.eup %528 }
 0x226   :  { %v172_v31 = vmul.f32 %v529_v30, %v165_v14 }
 0x228   :  { %v173_v32 = vmax.f32 %v172_v31, 0.0 }
 0x22a   :  { %482 = vmatmul.mubr.f32.vlgmr.msra.gmra.mxu1 %v173_v32 }
 0x2ea   :  { %v263_v34 = vpop.f32.mrf.mxu1 }
 0x2eb   :  { %v264_v35 = vadd.f32 %v406_v33, %v263_v34 }
 0x2ec   :  { %v483_v36 = vpop.f32.mrf.mxu1 }
 0x2ed   :  { %267 = vadd.xlane.f32.xlu1 %v264_v35 }
 0x376   :  { %v268_v42 = vpop.xlane.xlu1 %267 }
 0x377   :  { %v269_v43 = vmul.f32 0.0078125, %v268_v42 }
 0x379   :  { %v270_v44 = vsub.f32 %v264_v35, %v269_v43 }
 0x37b   :  { %v271_v45 = vmul.f32 %v270_v44, %v270_v44 }
 0x37d   :  { %272 = vadd.xlane.f32.xlu1 %v271_v45 }
 0x406   :  { %v273_v57 = vpop.xlane.xlu1 %272 }
 0x407   :  { %v274_v58 = vmul.f32 0.0078125, %v273_v57 }
 0x409   :  { %v275_v59 = vadd.f32 1e-05, %v274_v58 }
 0x40b   :  { %530 = vrsqrt.f32 %v275_v59 }
 0x418   :  { %v531_v60 = vpop.eup %530 }
 0x419   :  { %v277_v61 = vmul.f32 %v531_v60, %v270_v44 }
 0x41b   :  { %v278_v62 = vmax.f32 %v277_v61, 0.0 }
 0x41d   :  { %517 = vmatmul.mubr.f32.vlgmr.msra.gmra.mxu0 %v278_v62 }
 0x4dd   :  { %v368_v1 = vpop.f32.mrf.mxu0 }
 0x4de   :  { %v369_v2 = vadd.f32 %v407_v63, %v368_v1 }
 0x4df   :  { %v518_v3 = vpop.f32.mrf.mxu0 }
 0x4e0   :  { %v373_v4 = vmin.f32 %v369_v2, 20.0  ;;  %vm372_vm3 = vcmp.gt.f32.partialorder %v369_v2, 20.0 }
 0x4e2   :  { %v374_v5 = vmul.f32 1.442695, %v373_v4 }
 0x4e4   :  { %532 = vpow2.f32 %v374_v5 }
 0x4f1   :  { %v533_v0 = vpop.eup %532 }
 0x4f2   :  { %v376_v6 = vadd.f32 1.0, %v533_v0  ;;  %v379_v7 = vmul.f32 -0.5, %v533_v0  ;;  %v382_v9 = vand.u32 2147483647, %v533_v0 }
 0x4f4   :  { %534 = vlog2.f32 %v376_v6  ;;  %v380_v8 = vadd.f32 1.0, %v379_v7  ;;  %vm383_vm2 = vcmp.lt.f32.partialorder %v382_v9, 0.0004427343 }
 0x4f6   :  { %v381_v12 = vmul.f32 %v533_v0, %v380_v8 }
 0x501   :  { %v535_v10 = vpop.eup %534 }
 0x502   :  { %v378_v11 = vmul.f32 0.6931472, %v535_v10 }
 0x504   :  { %v384_v13 = vsel %vm383_vm2, %v381_v12, %v378_v11 }
 0x505   :  { %v385_v14 = vsel %vm372_vm3, %v369_v2, %v384_v13 }
 0x506   :  { %386 = vst [vmem:[#allocation10] sm:$0xff] %v385_v14 }
 0x507   :  { %627 = shalt.err (!%p624_p10)
}
 0x508   :  { %396 = dma.vmem_to_hbm [thread:$0]  %s394_s24, 128, %s760_s7, [#allocation4]  }
 0x509   :  { %642 = dma.done.wait [#allocation4], 128  }
 0x50a   :  { %643 = vsyncadd [#allocation4], 4294967168 }
 0x50b   :  { %400 = vsyncpa [#allocation3], 1 }
 0x50c   :  { %401 = vsyncpa [#allocation6], 1 }
 0x50d   :  { %402 = vsyncpa [#allocation9], 1 }
 0x50e   :  { %403 = vsyncpa [#allocation4], 1 }

</bundles_post_ra>
